<compile_context>
chip_gen: v7x
topology: tpu7x:2x2x1
jax: 0.10.0
libtpu: 0.0.40
codegen_flags: <defaults>
</compile_context>

<pallas_src>
import functools

import jax
import jax.numpy as jnp
from jax import lax
from jax.experimental import pallas as pl
from jax.experimental.pallas import tpu as pltpu


_TK_MAX = 16384        # upper bound on the K tile (long contiguous DMA bursts)
_TM_DEFAULT = 256      # row-block height for the megacore (row-blocked) path
_LANES = 128
_SUBLANES = 8


def _vmem_capacity_bytes():
    try:
        return int(pltpu.get_tpu_info().vmem_capacity_bytes)
    except Exception:  # pragma: no cover - conservative fallback (v7x per-core)
        return 64 * 2**20


def _vmem_limit(need_bytes, cap_bytes):
    # Leave headroom for Mosaic internal scratch; never request all of VMEM.
    return int(min(max(need_bytes + (8 << 20), 32 << 20), int(cap_bytes * 0.9)))


def _choose_k_tile(k, per_col_bytes, resident_bytes, budget_bytes, tk_override):
    """Pick the K tile: full extent (== K) when it fits, else a 128-multiple.

    tk_override (tests only) must be a multiple of 128 or >= K.
    """
    if tk_override is not None:
        tk = k if tk_override >= k else int(tk_override)
    else:
        free = max(budget_bytes - resident_bytes, 0)
        cap = (free // max(per_col_bytes, 1)) // _LANES * _LANES
        cap = max(min(cap, _TK_MAX), _LANES)
        tk = k if k <= cap else cap
    num_k = pl.cdiv(k, tk)
    ragged = (k % tk) != 0
    return tk, num_k, ragged


def _mask_k_tail(tile, kk, tk, k_true):
    """Zero the out-of-range K columns of the ragged last tile."""
    col = kk * tk + lax.broadcasted_iota(jnp.int32, tile.shape, 1)
    return jnp.where(col < k_true, tile, jnp.zeros((), tile.dtype))


# --------------------------------------------------------------------------
# Kernel 1: gram only (runs once in __init__ to build the target gram).
# --------------------------------------------------------------------------
def _gram_kernel(feat_ref, g_ref, *, inv_denom, k_true, tk, ragged_k,
                 mxu_bf16):
    kk = pl.program_id(0)

    @pl.when(kk == 0)
    def _():
        g_ref[...] = jnp.zeros_like(g_ref)

    f = feat_ref[...]                                   # (M, tk)
    if ragged_k:
        f = _mask_k_tail(f, kk, tk, k_true)
    if mxu_bf16:
        f = f.astype(jnp.bfloat16)
    # NT form: contract the last axis of both operands (F @ F.T, no vxpose).
    g_ref[...] += lax.dot_general(f, f, (((1,), (1,)), ((), ())),
                                  preferred_element_type=jnp.float32)

    @pl.when(kk == pl.num_programs(0) - 1)
    def _():
        g_ref[...] = g_ref[...] * inv_denom


def gram_matrix_pallas(feats, denom, *, mxu_bf16=False, tk=None):
    """feats: (M, K). Returns gram(feats) / denom as an (M, M) f32 array."""
    m, k = feats.shape
    esize = feats.dtype.itemsize
    cap = _vmem_capacity_bytes()
    budget = cap // 2
    resident = 2 * m * m * 4                       # double-buffered (M,M) output
    per_col = 2 * m * esize                        # double-buffered feature cols
    tk, num_k, ragged_k = _choose_k_tile(k, per_col, resident, budget, tk)
    need = resident + 2 * m * tk * esize
    kernel = functools.partial(
        _gram_kernel, inv_denom=1.0 / float(denom), k_true=k, tk=tk,
        ragged_k=ragged_k, mxu_bf16=mxu_bf16)
    return pl.pallas_call(
        kernel,
        out_shape=jax.ShapeDtypeStruct((m, m), jnp.float32),
        grid=(num_k,),
        in_specs=[pl.BlockSpec((m, tk), lambda kk: (0, kk))],
        out_specs=pl.BlockSpec((m, m), lambda kk: (0, 0)),
        compiler_params=pltpu.CompilerParams(
            dimension_semantics=("arbitrary",),
            vmem_limit_bytes=_vmem_limit(need, cap)),
    )(feats)


# --------------------------------------------------------------------------
# Kernel 2a: loss, single row block (common small-M / large-K regime).
# The feature slab is read from HBM exactly once; the gram never hits HBM.
# --------------------------------------------------------------------------
def _loss_kernel_single(feat_ref, tgt_ref, loss_ref, acc_ref, *, inv_denom,
                        inv_mm, k_true, tk, ragged_k, mxu_bf16):
    kk = pl.program_id(0)

    @pl.when(kk == 0)
    def _():
        acc_ref[...] = jnp.zeros_like(acc_ref)

    f = feat_ref[...]                                   # (M, tk)
    if ragged_k:
        f = _mask_k_tail(f, kk, tk, k_true)
    if mxu_bf16:
        f = f.astype(jnp.bfloat16)
    acc_ref[...] += lax.dot_general(f, f, (((1,), (1,)), ((), ())),
                                    preferred_element_type=jnp.float32)

    @pl.when(kk == pl.num_programs(0) - 1)
    def _():
        diff = acc_ref[...] * inv_denom - tgt_ref[...]
        loss_ref[0] = jnp.sum(diff * diff) * inv_mm


# --------------------------------------------------------------------------
# Kernel 2b: loss, row-blocked (megacore path for larger M on v7x).
# --------------------------------------------------------------------------
def _loss_kernel_blocked(lhs_ref, rhs_ref, tgt_ref, out_ref, acc_ref, *,
                         inv_denom, inv_mm, k_true, tk, ragged_k,
                         m_true, tm, ragged_m, mxu_bf16):
    i = pl.program_id(0)
    kk = pl.program_id(1)

    @pl.when(kk == 0)
    def _():
        acc_ref[...] = jnp.zeros_like(acc_ref)

    lhs = lhs_ref[...]                  # (tm, tk) rows of this gram row block
    rhs = rhs_ref[...]                  # (M, tk)  all rows (the gram columns)
    if ragged_k:
        lhs = _mask_k_tail(lhs, kk, tk, k_true)
        rhs = _mask_k_tail(rhs, kk, tk, k_true)
    if mxu_bf16:
        lhs = lhs.astype(jnp.bfloat16)
        rhs = rhs.astype(jnp.bfloat16)
    acc_ref[...] += lax.dot_general(lhs, rhs, (((1,), (1,)), ((), ())),
                                    preferred_element_type=jnp.float32)

    @pl.when(kk == pl.num_programs(1) - 1)
    def _():
        diff = acc_ref[...] * inv_denom - tgt_ref[...]
        if ragged_m:
            # Rows beyond M in the last ragged row block hold garbage in both
            # the accumulator and the target block; null their contribution.
            rows = i * tm + lax.broadcasted_iota(jnp.int32, diff.shape, 0)
            diff = jnp.where(rows < m_true, diff, 0.0)
        partial = jnp.sum(diff * diff) * inv_mm
        out_ref[...] = partial * jnp.ones((1, _SUBLANES, _LANES), jnp.float32)


def style_mse_loss(feats, target, denom, *, mxu_bf16=False, tm=None, tk=None):
    """mse(gram(feats)/denom, target) without materializing the gram in HBM."""
    m, k = feats.shape
    if target.shape != (m, m):
        raise ValueError(f"target gram shape {target.shape} does not match "
                         f"features with {m} rows")
    target = target.astype(jnp.float32)
    esize = feats.dtype.itemsize
    cap = _vmem_capacity_bytes()
    budget = cap // 2
    inv_denom = 1.0 / float(denom)
    inv_mm = 1.0 / float(m * m)

    use_blocked = (tm is not None) or (m >= 2 * _TM_DEFAULT)
    if not use_blocked:
        # Single row block: the feature slab is DMA'd exactly once (bandwidth
        # optimal) and the whole (M, M) accumulator/target stay resident.
        resident = 3 * m * m * 4            # target (x2 buffers) + f32 acc
        per_col = 2 * m * esize
        tk, num_k, ragged_k = _choose_k_tile(k, per_col, resident, budget, tk)
        need = resident + 2 * m * tk * esize
        kernel = functools.partial(
            _loss_kernel_single, inv_denom=inv_denom, inv_mm=inv_mm,
            k_true=k, tk=tk, ragged_k=ragged_k, mxu_bf16=mxu_bf16)
        loss = pl.pallas_call(
            kernel,
            out_shape=jax.ShapeDtypeStruct((1,), jnp.float32),
            grid=(num_k,),
            in_specs=[
                pl.BlockSpec((m, tk), lambda kk: (0, kk)),
                pl.BlockSpec((m, m), lambda kk: (0, 0)),   # resident target
            ],
            out_specs=pl.BlockSpec(memory_space=pltpu.MemorySpace.SMEM),
            scratch_shapes=[pltpu.VMEM((m, m), jnp.float32)],
            compiler_params=pltpu.CompilerParams(
                dimension_semantics=("arbitrary",),
                vmem_limit_bytes=_vmem_limit(need, cap)),
        )(feats, target)
        return loss[0]

    # Row-blocked path: the "parallel" row axis lets v7x's two TensorCores
    # split the gram rows; each row block accumulates a (tm, M) slab and
    # emits a lane-dense per-block partial loss summed outside.
    tm = _TM_DEFAULT if tm is None else int(tm)
    tm = min(max((tm // _SUBLANES) * _SUBLANES, _SUBLANES), max(m, _SUBLANES))
    num_i = pl.cdiv(m, tm)
    ragged_m = (m % tm) != 0
    resident = 2 * tm * m * 4 + tm * m * 4     # target block (x2) + f32 acc
    per_col = 2 * (tm + m) * esize             # lhs + rhs, double-buffered
    tk, num_k, ragged_k = _choose_k_tile(k, per_col, resident, budget, tk)
    need = resident + 2 * (tm + m) * tk * esize
    kernel = functools.partial(
        _loss_kernel_blocked, inv_denom=inv_denom, inv_mm=inv_mm,
        k_true=k, tk=tk, ragged_k=ragged_k,
        m_true=m, tm=tm, ragged_m=ragged_m, mxu_bf16=mxu_bf16)
    partial = pl.pallas_call(
        kernel,
        out_shape=jax.ShapeDtypeStruct((num_i, _SUBLANES, _LANES), jnp.float32),
        grid=(num_i, num_k),
        in_specs=[
            pl.BlockSpec((tm, tk), lambda i, kk: (i, kk)),   # gram-row slab
            pl.BlockSpec((m, tk), lambda i, kk: (0, kk)),    # all rows (cols)
            pl.BlockSpec((tm, m), lambda i, kk: (i, 0)),     # target rows
        ],
        out_specs=pl.BlockSpec((1, _SUBLANES, _LANES), lambda i, kk: (i, 0, 0)),
        scratch_shapes=[pltpu.VMEM((tm, m), jnp.float32)],
        compiler_params=pltpu.CompilerParams(
            dimension_semantics=("parallel", "arbitrary"),
            vmem_limit_bytes=_vmem_limit(need, cap)),
    )(feats, feats, target)
    return jnp.sum(partial[:, 0, 0])


# --------------------------------------------------------------------------
# Module
# --------------------------------------------------------------------------
class StyleLoss:
    """JAX/Pallas port of the PyTorch StyleLoss module.

    __call__(x) returns x unchanged and stores mse(gram(x), target) in
    self.loss, matching the PyTorch side-effect semantics.
    # TODO(synk): mutating self.loss is a Python side effect; under jax.jit
    # prefer a functional wrapper returning (x, loss) (and a custom_vjp if
    # gradients w.r.t. x are required for the style-transfer optimizer).
    """

    def __init__(self, target_feature, *, mxu_bf16=False):
        b, h, w, f = target_feature.shape
        self._mxu_bf16 = mxu_bf16
        feats = jnp.reshape(target_feature, (b * h, w * f))   # metadata only
        self.target = jax.lax.stop_gradient(                  # .detach()
            gram_matrix_pallas(feats, float(b * h * w * f), mxu_bf16=mxu_bf16))
        self.loss = jnp.float32(0.0)       # F.mse_loss(target, target) == 0

    def __call__(self, x):
        b, h, w, f = x.shape
        feats = jnp.reshape(x, (b * h, w * f))
        self.loss = style_mse_loss(feats, self.target, float(b * h * w * f),
                                   mxu_bf16=self._mxu_bf16)
        return x


# --------------------------------------------------------------------------
# Self-test
# --------------------------------------------------------------------------
def _ref_gram(x):
    b, h, w, f = x.shape
    ft = x.reshape(b * h, w * f).astype(jnp.float32)
    g = jnp.matmul(ft, ft.T, precision=lax.Precision.HIGHEST)
    return g / (b * h * w * f)


def _ref_loss(x, t):
    return jnp.mean((_ref_gram(x) - _ref_gram(t)) ** 2)


if __name__ == "__main__":
    key = jax.random.PRNGKey(0)
    k1, k2, k3, k4, k5, k6 = jax.random.split(key, 6)

    # Case 1: module-level check at the demo shape (single-block fast path).
    shape = (2, 16, 16, 4)                        # (B, H, W, F): M=32, K=64
    tgt = jax.random.normal(k1, shape, dtype=jnp.float32)
    x = jax.random.normal(k2, shape, dtype=jnp.float32)
    module = StyleLoss(tgt)
    out = jax.block_until_ready(module(x))
    loss = jax.block_until_ready(module.loss)
    assert out.shape == x.shape and jnp.allclose(out, x)
    assert jnp.allclose(module.target, _ref_gram(tgt), rtol=1e-5, atol=1e-6)
    assert jnp.allclose(loss, _ref_loss(x, tgt), rtol=1e-4, atol=1e-8)

    # Case 2: ragged K tail (K=160 with a forced 128-wide K tile -> masking).
    shape2 = (2, 16, 16, 10)                      # M=32, K=160
    tgt2 = jax.random.normal(k3, shape2, dtype=jnp.float32)
    x2 = jax.random.normal(k4, shape2, dtype=jnp.float32)
    b, h, w, f = shape2
    denom2 = float(b * h * w * f)
    tg2 = gram_matrix_pallas(tgt2.reshape(b * h, w * f), denom2, tk=128)
    loss2 = style_mse_loss(x2.reshape(b * h, w * f), tg2, denom2, tk=128)
    loss2 = jax.block_until_ready(loss2)
    assert jnp.allclose(tg2, _ref_gram(tgt2), rtol=1e-5, atol=1e-6)
    assert jnp.allclose(loss2, _ref_loss(x2, tgt2), rtol=1e-4, atol=1e-8)

    # Case 3: megacore row-blocked path (forced tm=128, ragged last row block).
    shape3 = (3, 72, 8, 8)                        # M=216, K=64
    tgt3 = jax.random.normal(k5, shape3, dtype=jnp.float32)
    x3 = jax.random.normal(k6, shape3, dtype=jnp.float32)
    b, h, w, f = shape3
    denom3 = float(b * h * w * f)
    tg3 = gram_matrix_pallas(tgt3.reshape(b * h, w * f), denom3)
    loss3 = style_mse_loss(x3.reshape(b * h, w * f), tg3, denom3, tm=128)
    loss3 = jax.block_until_ready(loss3)
    assert jnp.allclose(tg3, _ref_gram(tgt3), rtol=1e-5, atol=1e-6)
    assert jnp.allclose(loss3, _ref_loss(x3, tgt3), rtol=1e-4, atol=1e-8)

    print("KERNEL_OK")
</pallas_src>

<mosaic_0001>
module attributes {stable_mosaic.version = 11 : i64} {
  func.func @_gram_kernel(%arg0: i32, %arg1: memref<32x64xf32, #tpu.memory_space<vmem>>, %arg2: memref<32x32xf32, #tpu.memory_space<vmem>>) attributes {dimension_semantics = [#tpu.dimension_semantics<arbitrary>], iteration_bounds = array<i64: 1>, scalar_prefetch = 0 : i64, scratch_operands = 0 : i64, tpu.core_type = #tpu.core_type<tc>, window_params = [{transform_indices = @transform_0, window_bounds = array<i64: 32, 64>}, {pipeline_mode = #tpu.pipeline_mode<synchronous>, transform_indices = @transform_1, window_bounds = array<i64: 32, 32>}]} {
    %c0_i32 = arith.constant 0 : i32
    %0 = arith.cmpi eq, %arg0, %c0_i32 : i32
    %1 = arith.extui %0 : i1 to i32
    %c0_i32_0 = arith.constant 0 : i32
    %2 = arith.cmpi ne, %1, %c0_i32_0 : i32
    scf.if %2 {
      %cst_8 = arith.constant 0.000000e+00 : f32
      %11 = vector.broadcast %cst_8 : f32 to vector<32x32xf32>
      %c0_9 = arith.constant 0 : index
      %c0_10 = arith.constant 0 : index
      %12 = vector.load %arg2[%c0_9, %c0_10] : memref<32x32xf32, #tpu.memory_space<vmem>>, vector<32x32xf32>
      tpu.vector_store %arg2[%c0_9, %c0_10], %11 {strides = array<i32>} : memref<32x32xf32, #tpu.memory_space<vmem>>, vector<32x32xf32>,
    } else {
    }
    %c0 = arith.constant 0 : index
    %c0_1 = arith.constant 0 : index
    %3 = vector.load %arg1[%c0, %c0_1] : memref<32x64xf32, #tpu.memory_space<vmem>>, vector<32x64xf32>
    %c0_2 = arith.constant 0 : index
    %c0_3 = arith.constant 0 : index
    %4 = vector.load %arg2[%c0_2, %c0_3] : memref<32x32xf32, #tpu.memory_space<vmem>>, vector<32x32xf32>
    %cst = arith.constant dense<0.000000e+00> : vector<32x32xf32>
    %5 = tpu.matmul %3, %3, %cst {dimension_numbers = #tpu.dot_dimension_numbers<[1], [1], [0], [0], [0, 0, 1, 0], [], []>} : vector<32x64xf32>, vector<32x64xf32>, vector<32x32xf32> -> vector<32x32xf32>
    %6 = arith.addf %4, %5 : vector<32x32xf32>
    %c0_4 = arith.constant 0 : index
    %c0_5 = arith.constant 0 : index
    %7 = vector.load %arg2[%c0_4, %c0_5] : memref<32x32xf32, #tpu.memory_space<vmem>>, vector<32x32xf32>
    tpu.vector_store %arg2[%c0_4, %c0_5], %6 {strides = array<i32>} : memref<32x32xf32, #tpu.memory_space<vmem>>, vector<32x32xf32>,
    %c0_i32_6 = arith.constant 0 : i32
    %8 = arith.cmpi eq, %arg0, %c0_i32_6 : i32
    %9 = arith.extui %8 : i1 to i32
    %c0_i32_7 = arith.constant 0 : i32
    %10 = arith.cmpi ne, %9, %c0_i32_7 : i32
    scf.if %10 {
      %c0_8 = arith.constant 0 : index
      %c0_9 = arith.constant 0 : index
      %11 = vector.load %arg2[%c0_8, %c0_9] : memref<32x32xf32, #tpu.memory_space<vmem>>, vector<32x32xf32>
      %cst_10 = arith.constant 4.8828125E-4 : f32
      %12 = vector.broadcast %cst_10 : f32 to vector<32x32xf32>
      %13 = arith.mulf %11, %12 : vector<32x32xf32>
      %c0_11 = arith.constant 0 : index
      %c0_12 = arith.constant 0 : index
      %14 = vector.load %arg2[%c0_11, %c0_12] : memref<32x32xf32, #tpu.memory_space<vmem>>, vector<32x32xf32>
      tpu.vector_store %arg2[%c0_11, %c0_12], %13 {strides = array<i32>} : memref<32x32xf32, #tpu.memory_space<vmem>>, vector<32x32xf32>,
    } else {
    }
    return
  }
  func.func @transform_0(%arg0: i32) -> (i32, i32) {
    %c0_i32 = arith.constant 0 : i32
    %c0_i32_0 = arith.constant 0 : i32
    return %c0_i32, %arg0 : i32, i32
  }
  func.func @transform_1(%arg0: i32) -> (i32, i32) {
    %c0_i32 = arith.constant 0 : i32
    %c0_i32_0 = arith.constant 0 : i32
    %c0_i32_1 = arith.constant 0 : i32
    return %c0_i32, %c0_i32_0 : i32, i32
  }
}

</mosaic_0001>

<bundles_post_ra>
// kernel: tpu_custom_call.1
= control target key start
LH: loop header
LB: loop body
LE: loop exit
PB: predicated region body
PF: predicated region fallthrough
CT: control target
= control target key end

     0   :  { %6 = vsyncpa [#allocation3], 0  ;;  %s361_s0 = inlined_call_operand.hbm [shape: f32[32,64], index: 0, kind: input, shape index: {}]   ;;  %s362_s1 = inlined_call_operand.hbm [shape: f32[32,32], index: 1, kind: output, shape index: {}]  }
   0x1   :  { %7 = vsyncpa [#allocation4], 0  ;;  %s278_s6 = smov [#allocation2]   ;;  %s230_s10 = scalar_lea.hbm %s361_s0, 512 }
   0x2   :  { %s13_s7 = sshll.u32 %s278_s6, 4  ;;  %p231_p0 = scmp.ne.s32.totalorder %s361_s0, %s230_s10  ;;  %s14_s7 = int_to_ptr.vmem [resolvable:$true] %s13_s7 }
   0x3   :  { %p234_p1 = scmp.lt.u32.totalorder %s230_s10, %s361_s0 }
   0x5   :  { %p236_p2 = pnand %p234_p1, %p231_p0 }
   0x7   :  { %239 = shalt.err (!%p236_p2)
}
   0x8   :  { %s240_s15 = scalar_lea.vmem %s14_s7, 512  ;;  %p245_p4 = scmp.lt.s32.totalorder %s14_s7, %s14_s7 }
   0x9   :  { %p241_p3 = scmp.ne.s32.totalorder %s14_s7, %s240_s15  ;;  %p246_p5 = scmp.lt.s32.totalorder %s240_s15, %s240_s15 }
   0xb   :  { %p247_p6 = por %p246_p5, %p245_p4 }
   0xd   :  { %p248_p7 = pnand %p247_p6, %p241_p3 }
   0xf   :  { %251 = shalt.err (!%p248_p7)
}
  0x10   :  { %s279_s16 = smov 128   ;;  %s280_s17 = smov 8  }
  0x11   :  { %19 = dma.hbm_to_vmem [thread:$0]  %s361_s0, 512, %s14_s7, [#allocation3], %s279_s16, %s279_s16, %s280_s17  }
  0x12   :  { %274 = dma.done.wait [#allocation3], 512  }
  0x13   :  { %275 = vsyncadd [#allocation3], 4294966784  ;;  %vm27_vm0 = vcmask 261120   ;;  %v281_v0 = vmov 0.0   ;;  %vm40_vm1 = vcmask 523264   ;;  %v32_v2 = vld [vmem:[#allocation2] sm:$0xff] }
  0x14   :  { %29 = vst.msk [vmem:[#allocation5 + $0x8] sm:$0xff] %vm27_vm0, %v281_v0  ;;  %28 = vst.msk [vmem:[#allocation5] sm:$0xff] %vm27_vm0, %v281_v0  ;;  %v33_v3 = vld [vmem:[#allocation2 + $0x8] sm:$0xff]  ;;  %v34_v4 = vld [vmem:[#allocation2 + $0x10] sm:$0xff]  ;;  %203 = vmatprep.mubr.msk.f32.mxu0 %vm40_vm1, %v32_v2  ;;  %s282_s0 = smov [#allocation5]  }
  0x15   :  { %30 = vst.msk [vmem:[#allocation5 + $0x10] sm:$0xff] %vm27_vm0, %v281_v0  ;;  %31 = vst.msk [vmem:[#allocation5 + $0x18] sm:$0xff] %vm27_vm0, %v281_v0  ;;  %v209_v5 = vpack.c.bf16 %v33_v3, %v32_v2  ;;  %v35_v6 = vld [vmem:[#allocation2 + $0x18] sm:$0xff]  ;;  %206 = vmatprep.mubr.msk.f32.mxu1 %vm40_vm1, %v34_v4  ;;  %s167_s20 = sshll.u32 %s282_s0, 4  ;;  %s168_s20 = int_to_ptr.vmem [resolvable:$true] %s167_s20 }
  0x16   :  { %vm314_vm2 = vmpackc.low %vm40_vm1, %vm40_vm1  ;;  %v215_v7 = vpack.c.bf16 %v35_v6, %v34_v4  ;;  %s252_s21 = scalar_lea.vmem %s168_s20, 512  ;;  %p257_p9 = scmp.lt.s32.totalorder %s168_s20, %s168_s20 }
  0x17   :  { %211 = vmatprep.subr.msk.bf16.mxu0 %vm314_vm2, %v209_v5  ;;  %221 = vmatprep.subr.msk.bf16.mxu1 %vm314_vm2, %v209_v5  ;;  %p253_p8 = scmp.ne.s32.totalorder %s168_s20, %s252_s21  ;;  %p258_p10 = scmp.lt.s32.totalorder %s252_s21, %s252_s21 }
  0x18   :  { %214 = vmatpush3.bf16.xpose.msk.msra.mxu0 %vm314_vm2, %v209_v5  ;;  %223 = vmatpush3.bf16.xpose.msk.msra.mxu1 %vm314_vm2, %v209_v5 }
  0x19   :  { %217 = vmatprep.subr.msk.bf16.mxu0 %vm314_vm2, %v215_v7  ;;  %222 = vmatprep.subr.msk.bf16.mxu1 %vm314_vm2, %v215_v7  ;;  %p259_p11 = por %p258_p10, %p257_p9 }
  0x1b   :  { %v37_v8 = vld [vmem:[#allocation5 + $0x8] sm:$0xff]  ;;  %v36_v10 = vld [vmem:[#allocation5] sm:$0xff]  ;;  %p260_p12 = pnand %p259_p11, %p253_p8 }
  0x1c   :  { %v39_v9 = vld [vmem:[#allocation5 + $0x18] sm:$0xff]  ;;  %v38_v11 = vld [vmem:[#allocation5 + $0x10] sm:$0xff] }
  0x20   :  { %220 = vmatpush3.bf16.xpose.msk.msra.mxu0 %vm314_vm2, %v215_v7  ;;  %224 = vmatpush3.bf16.xpose.msk.msra.mxu1 %vm314_vm2, %v215_v7 }
  0x27   :  { %204 = vmatmul.mubr.msk.f32.vlgmr.msra.gmra.mrb[0].mxu0 %vm40_vm1, %v33_v3  ;;  %207 = vmatmul.mubr.msk.f32.vlgmr.msra.gmra.mrb[0].mxu1 %vm40_vm1, %v35_v6 }
  0xfa   :  { %v205_v12 = vpop.f32.mrb[0].mxu0  ;;  %v208_v13 = vpop.f32.mrb[0].mxu1 }
  0xfb   :  { %v139_v14 = vadd.f32 %v205_v12, %v37_v8  ;;  %v141_v15 = vadd.f32 %v208_v13, %v39_v9  ;;  %v119_v16 = vpop.f32.mrb[1].mxu0  ;;  %v129_v17 = vpop.f32.mrb[1].mxu1 }
  0xfc   :  { %v138_v18 = vadd.f32 %v119_v16, %v36_v10  ;;  %v140_v19 = vadd.f32 %v129_v17, %v38_v11 }
  0xfd   :  { %144 = vst.msk [vmem:[#allocation5 + $0x8] sm:$0xff] %vm27_vm0, %v139_v14  ;;  %146 = vst.msk [vmem:[#allocation5 + $0x18] sm:$0xff] %vm27_vm0, %v141_v15 }
  0xfe   :  { %143 = vst.msk [vmem:[#allocation5] sm:$0xff] %vm27_vm0, %v138_v18  ;;  %145 = vst.msk [vmem:[#allocation5 + $0x10] sm:$0xff] %vm27_vm0, %v140_v19 }
 0x104   :  { %v151_v20 = vld [vmem:[#allocation5 + $0x8] sm:$0xff]  ;;  %v153_v21 = vld [vmem:[#allocation5 + $0x18] sm:$0xff] }
 0x105   :  { %v150_v22 = vld [vmem:[#allocation5] sm:$0xff]  ;;  %v152_v23 = vld [vmem:[#allocation5 + $0x10] sm:$0xff]  ;;  %v155_v24 = vmul.f32 0.00048828125, %v151_v20  ;;  %v157_v25 = vmul.f32 0.00048828125, %v153_v21 }
 0x106   :  { %v154_v26 = vmul.f32 0.00048828125, %v150_v22  ;;  %v156_v27 = vmul.f32 0.00048828125, %v152_v23 }
 0x107   :  { %159 = vst.msk [vmem:[#allocation5 + $0x8] sm:$0xff] %vm27_vm0, %v155_v24  ;;  %161 = vst.msk [vmem:[#allocation5 + $0x18] sm:$0xff] %vm27_vm0, %v157_v25 }
 0x108   :  { %158 = vst.msk [vmem:[#allocation5] sm:$0xff] %vm27_vm0, %v154_v26  ;;  %160 = vst.msk [vmem:[#allocation5 + $0x10] sm:$0xff] %vm27_vm0, %v156_v27 }
 0x109   :  { %263 = shalt.err (!%p260_p12)
}
 0x10a   :  { %s264_s24 = scalar_lea.hbm %s362_s1, 512 }
 0x10b   :  { %p265_p13 = scmp.ne.s32.totalorder %s362_s1, %s264_s24  ;;  %p268_p0 = scmp.lt.u32.totalorder %s264_s24, %s362_s1 }
 0x10d   :  { %p270_p1 = pnand %p268_p0, %p265_p13 }
 0x10f   :  { %273 = shalt.err (!%p270_p1)
}
 0x110   :  { %173 = dma.vmem_to_hbm [thread:$0]  %s168_s20, 512, %s362_s1, [#allocation4], %s279_s16, %s279_s16, %s280_s17  }
 0x111   :  { %276 = dma.done.wait [#allocation4], 512  }
 0x112   :  { %277 = vsyncadd [#allocation4], 4294966784 }
 0x113   :  { %177 = vsyncpa [#allocation3], 1 }
 0x114   :  { %178 = vsyncpa [#allocation4], 1 }

</bundles_post_ra>
